<compile_context>
chip_gen: v6e
topology: v6e:2x2x1
jax: 0.10.0
libtpu: 0.0.40
codegen_flags: <defaults>
</compile_context>

<pallas_src>
import jax
import jax.numpy as jnp
from jax.experimental import pallas as pl
from jax.experimental.pallas import tpu as pltpu


_RESIDENT_VMEM_BUDGET = 40 * 1024 * 1024   # actual-use budget (v7x: 64 MiB / TC)
_VMEM_LIMIT_CAP = 48 * 1024 * 1024         # vmem_limit_bytes cap, safe on v5e/v6e/v7x


def _round_up(x: int, m: int) -> int:
    return ((x + m - 1) // m) * m


def _pad2(a, rows, cols):
    pr = rows - a.shape[0]
    pc = cols - a.shape[1]
    if pr == 0 and pc == 0:
        return a
    return jnp.pad(a, ((0, pr), (0, pc)))


# ----------------------------------------------------------------------------
# Kernels
# ----------------------------------------------------------------------------
def _cross_attn_kernel_resident(x_ref, wt_ref, b_ref, qt_ref, p_ref, s_ref):
    """Single-pass kernel: weight / bias / query stay resident in VMEM.

    x_ref : (tm, E_pad)      streaming tile of flattened paper embeddings
    wt_ref: (E_pad, Q_pad)   Linear weight, pre-transposed to (in, out)
    b_ref : (1, Q_pad) f32   Linear bias
    qt_ref: (Q_pad, Lq_pad)  query embeddings, pre-transposed
    p_ref : (tm, Q_pad) f32  projected embeddings (output)
    s_ref : (tm, 1)  f32     per-row max attention score (output)
    """
    proj = jnp.dot(x_ref[...], wt_ref[...], preferred_element_type=jnp.float32)
    proj = proj + b_ref[...]                              # f32 bias, added once
    p_ref[...] = proj.astype(p_ref.dtype)
    att = jnp.dot(proj.astype(qt_ref.dtype), qt_ref[...],
                  preferred_element_type=jnp.float32)     # (tm, Lq_pad)
    s_ref[...] = jnp.max(att, axis=-1, keepdims=True)     # (tm, 1)


def _cross_attn_kernel_ktiled(x_ref, wt_ref, b_ref, qt_ref, p_ref, s_ref,
                              acc_ref):
    """K-tiled fallback for embedding dims too large for a resident weight.

    Grid is (grid_m, grid_k); the f32 accumulator is written directly on the
    first K step (no separate zero-init store) and the bias add / second
    matmul / row-max are fused into the K-final branch.
    """
    k = pl.program_id(1)
    prod = jnp.dot(x_ref[...], wt_ref[...], preferred_element_type=jnp.float32)

    @pl.when(k == 0)
    def _first():
        acc_ref[...] = prod

    @pl.when(k > 0)
    def _accum():
        acc_ref[...] += prod

    @pl.when(k == pl.num_programs(1) - 1)
    def _finalize():
        proj = acc_ref[...] + b_ref[...]
        p_ref[...] = proj.astype(p_ref.dtype)
        att = jnp.dot(proj.astype(qt_ref.dtype), qt_ref[...],
                      preferred_element_type=jnp.float32)
        s_ref[...] = jnp.max(att, axis=-1, keepdims=True)


# ----------------------------------------------------------------------------
# Wrapper around pallas_call
# ----------------------------------------------------------------------------
def _project_and_score(x2, weight, bias, q2, *, compute_dtype=jnp.bfloat16,
                       block_m=512, block_k=1024, force_ktiled=False):
    """Fused Pallas call:  P = x2 @ weight.T + bias ;  s = max(P @ q2.T, -1).

    x2:     (M, E)    flattened paper embeddings
    weight: (Q, E)    nn.Linear weight (out_features, in_features)
    bias:   (Q,)
    q2:     (Lq, Q)   query embeddings
    Returns (P, s): P (M, Q) float32, s (M,) float32.
    """
    M, E = x2.shape
    Qd = weight.shape[0]
    Lq = q2.shape[0]

    cdt = jnp.dtype(compute_dtype)
    itemsize = cdt.itemsize
    sub = 16 if itemsize == 2 else 8          # bf16 native sublane tile is 16

    q_pad = _round_up(Qd, 128)
    lq_pad = _round_up(Lq, 8)
    e_pad = _round_up(E, 128)

    # TODO(synk): for very large query_dim (>~2048) add an N-tiling grid axis
    # over q_pad so the resident weight + (tm, q_pad) tiles stay well under
    # v7x's 64 MiB VMEM; for now just shrink the M tile.
    if q_pad > 1024:
        block_m = min(block_m, 256)
    block_m = max(sub, (block_m // sub) * sub)

    m_pad = _round_up(M, sub)
    tm = min(block_m, m_pad)
    m_pad = _round_up(m_pad, tm)
    # v7x megacore: make sure the "parallel" M axis has >= 2 tiles so both
    # TensorCores get work (harmless on the single-TC v5e/v6e).
    if m_pad // tm == 1 and tm % (2 * sub) == 0:
        tm //= 2
    grid_m = m_pad // tm

    # ---- choose resident vs. K-tiled (conservative 2x for double-buffering) --
    resident_bytes = 2 * (itemsize * (e_pad * q_pad + q_pad * lq_pad) + 4 * q_pad)
    stream_bytes = 2 * (itemsize * tm * e_pad + 4 * tm * q_pad + 4 * tm)
    use_resident = (not force_ktiled) and \
        (resident_bytes + stream_bytes <= _RESIDENT_VMEM_BUDGET)

    if not use_resident:
        tk = min(block_k, e_pad)
        tk = max(128, (tk // 128) * 128)
        e_pad = _round_up(e_pad, tk)
        grid_k = e_pad // tk

    # ---- operand prep: one tiny XLA transpose/cast per call (amortized over
    # the whole M stream) gives the kernel canonical (k, n)-layout RHS --------
    x_p = _pad2(x2.astype(cdt), m_pad, e_pad)
    wt_p = _pad2(weight.T.astype(cdt), e_pad, q_pad)             # (E, Q)
    b_p = _pad2(bias.reshape(1, Qd).astype(jnp.float32), 1, q_pad)
    q2p = q2
    if lq_pad != Lq:   # replicate a real query row -> row max unchanged
        q2p = jnp.concatenate(
            [q2, jnp.broadcast_to(q2[:1], (lq_pad - Lq, Qd))], axis=0)
    qt_p = _pad2(q2p.T.astype(cdt), q_pad, lq_pad)               # (Q, Lq)

    out_shape = (jax.ShapeDtypeStruct((m_pad, q_pad), jnp.float32),
                 jax.ShapeDtypeStruct((m_pad, 1), jnp.float32))

    if use_resident:
        grid = (grid_m,)
        in_specs = [
            pl.BlockSpec((tm, e_pad), lambda i: (i, 0)),       # x tile (streams)
            pl.BlockSpec((e_pad, q_pad), lambda i: (0, 0)),    # weight (resident)
            pl.BlockSpec((1, q_pad), lambda i: (0, 0)),        # bias   (resident)
            pl.BlockSpec((q_pad, lq_pad), lambda i: (0, 0)),   # query  (resident)
        ]
        out_specs = (pl.BlockSpec((tm, q_pad), lambda i: (i, 0)),
                     pl.BlockSpec((tm, 1), lambda i: (i, 0)))
        kernel = _cross_attn_kernel_resident
        scratch_shapes = []
        dim_sem = ("parallel",)
        vmem_need = resident_bytes + stream_bytes
        weight_streams = 1
    else:
        grid = (grid_m, grid_k)
        in_specs = [
            pl.BlockSpec((tm, tk), lambda i, k: (i, k)),       # x tile
            pl.BlockSpec((tk, q_pad), lambda i, k: (k, 0)),    # weight tile
            pl.BlockSpec((1, q_pad), lambda i, k: (0, 0)),     # bias
            pl.BlockSpec((q_pad, lq_pad), lambda i, k: (0, 0)),# query
        ]
        out_specs = (pl.BlockSpec((tm, q_pad), lambda i, k: (i, 0)),
                     pl.BlockSpec((tm, 1), lambda i, k: (i, 0)))
        kernel = _cross_attn_kernel_ktiled
        scratch_shapes = [pltpu.VMEM((tm, q_pad), jnp.float32)]
        dim_sem = ("parallel", "arbitrary")
        vmem_need = (2 * (itemsize * tm * tk + itemsize * tk * q_pad
                          + 4 * tm * q_pad + 4 * tm)
                     + 4 * tm * q_pad
                     + 2 * (itemsize * q_pad * lq_pad + 4 * q_pad))
        weight_streams = grid_m

    vmem_limit = int(min(max(vmem_need + (8 << 20), 32 << 20), _VMEM_LIMIT_CAP))

    flops = 2 * m_pad * e_pad * q_pad + 2 * m_pad * q_pad * lq_pad
    bytes_accessed = (itemsize * m_pad * e_pad
                      + itemsize * e_pad * q_pad * weight_streams
                      + 4 * q_pad
                      + itemsize * q_pad * lq_pad
                      + 4 * m_pad * q_pad
                      + 4 * m_pad)

    p_padded, s_padded = pl.pallas_call(
        kernel,
        out_shape=out_shape,
        grid=grid,
        in_specs=in_specs,
        out_specs=out_specs,
        scratch_shapes=scratch_shapes,
        compiler_params=pltpu.CompilerParams(
            dimension_semantics=dim_sem,
            vmem_limit_bytes=vmem_limit),
        cost_estimate=pl.CostEstimate(
            flops=flops, transcendentals=0, bytes_accessed=bytes_accessed),
    )(x_p, wt_p, b_p, qt_p)

    return p_padded[:M, :Qd], s_padded[:M, 0]


def cross_hard_attention(paper_embedding, query_embedding, weight, bias,
                         max_sent_len, merge=False, *,
                         compute_dtype=jnp.bfloat16, block_m=512, block_k=1024):
    """JAX/Pallas forward of CrossHardAttention.

    paper_embedding: (B, S, embedding_dim)
    query_embedding: (1, Lq, query_dim)
    weight:          (query_dim, embedding_dim)   -- nn.Linear weight
    bias:            (query_dim,)
    Returns: (1, max_sent_len, query_dim), float32.
    """
    B, S, E = paper_embedding.shape
    Qd = weight.shape[0]
    M = B * S

    x2 = paper_embedding.reshape(M, E)          # TimeDistributed flatten
    q2 = query_embedding.reshape(-1, Qd)        # (Lq, query_dim)

    projected, scores = _project_and_score(
        x2, weight, bias, q2, compute_dtype=compute_dtype,
        block_m=block_m, block_k=block_k)

    flattened = projected
    if merge:
        # TODO(synk): if merge=True becomes a hot path, fuse this per-query
        # column max into the kernel as a tiny (1, Lq) accumulator output
        # instead of re-reading `projected` and redoing P @ q^T here.
        att_full = jnp.matmul(projected, q2.T,
                              precision=jax.lax.Precision.HIGHEST)
        scores = jnp.concatenate([scores, jnp.max(att_full, axis=0)])
        flattened = jnp.concatenate(
            [flattened, q2.astype(projected.dtype)], axis=0)

    _, top_idx = jax.lax.top_k(scores, max_sent_len)
    top_idx = jnp.sort(top_idx)
    # top-k / sort / gather are data-dependent selection -> plain JAX.
    return flattened[top_idx][None, :, :]


if __name__ == "__main__":
    key = jax.random.PRNGKey(0)
    k1, k2, k3, k4 = jax.random.split(key, 4)

    # Small shapes consistent with the module.
    B, S, E, Qd, Lq, MAX_SENT = 2, 8, 32, 32, 6, 5

    paper = jax.random.normal(k1, (B, S, E), dtype=jnp.float32)
    query = jax.random.normal(k2, (1, Lq, Qd), dtype=jnp.float32)
    weight = jax.random.normal(k3, (Qd, E), dtype=jnp.float32) * 0.05
    bias = jax.random.normal(k4, (Qd,), dtype=jnp.float32) * 0.05

    HI = jax.lax.Precision.HIGHEST
    x2 = paper.reshape(-1, E)
    q2 = query.reshape(-1, Qd)

    proj_ref = jnp.matmul(x2, weight.T, precision=HI) + bias
    att_ref = jnp.einsum("mq,lq->ml", proj_ref, q2, precision=HI)
    score_ref = jnp.max(att_ref, axis=-1)

    # --- 1) fp32, merge=False: exact check (resident single-pass kernel) ----
    out = cross_hard_attention(paper, query, weight, bias, MAX_SENT,
                               merge=False, compute_dtype=jnp.float32)
    out = jax.block_until_ready(out)
    idx_ref = jnp.sort(jax.lax.top_k(score_ref, MAX_SENT)[1])
    out_ref = proj_ref[idx_ref][None]
    assert out.shape == (1, MAX_SENT, Qd)
    assert jnp.allclose(out, out_ref, atol=1e-4, rtol=1e-4)

    # --- 2) fp32, merge=True -------------------------------------------------
    out_m = cross_hard_attention(paper, query, weight, bias, MAX_SENT,
                                 merge=True, compute_dtype=jnp.float32)
    out_m = jax.block_until_ready(out_m)
    score_m = jnp.concatenate([score_ref, jnp.max(att_ref, axis=0)])
    flat_m = jnp.concatenate([proj_ref, q2], axis=0)
    idx_m = jnp.sort(jax.lax.top_k(score_m, MAX_SENT)[1])
    out_m_ref = flat_m[idx_m][None]
    assert out_m.shape == (1, MAX_SENT, Qd)
    assert jnp.allclose(out_m, out_m_ref, atol=1e-4, rtol=1e-4)

    # --- 3) default bf16 compute path (loose tolerance on proj / scores) ----
    proj_bf, score_bf = _project_and_score(x2, weight, bias, q2)   # bf16 default
    proj_bf = jax.block_until_ready(proj_bf)
    assert proj_bf.shape == (B * S, Qd) and score_bf.shape == (B * S,)
    assert jnp.allclose(proj_bf, proj_ref, atol=5e-2, rtol=5e-2)
    assert jnp.allclose(score_bf, score_ref, atol=5e-2, rtol=5e-2)
    out_bf = cross_hard_attention(paper, query, weight, bias, MAX_SENT)
    out_bf = jax.block_until_ready(out_bf)
    assert out_bf.shape == (1, MAX_SENT, Qd)

    # --- 4) K-tiled fallback path (grid_k > 1), fp32 exact ------------------
    E2 = 256
    k5, k6 = jax.random.split(k1)
    paper2 = jax.random.normal(k5, (B, S, E2), dtype=jnp.float32)
    weight2 = jax.random.normal(k6, (Qd, E2), dtype=jnp.float32) * 0.05
    x2b = paper2.reshape(-1, E2)
    proj2_ref = jnp.matmul(x2b, weight2.T, precision=HI) + bias
    score2_ref = jnp.max(
        jnp.einsum("mq,lq->ml", proj2_ref, q2, precision=HI), axis=-1)
    proj2, score2 = _project_and_score(
        x2b, weight2, bias, q2, compute_dtype=jnp.float32,
        block_k=128, force_ktiled=True)
    proj2 = jax.block_until_ready(proj2)
    assert jnp.allclose(proj2, proj2_ref, atol=1e-4, rtol=1e-4)
    assert jnp.allclose(score2, score2_ref, atol=1e-4, rtol=1e-4)

    print("KERNEL_OK")
</pallas_src>

<mosaic_0001>
module attributes {stable_mosaic.version = 11 : i64} {
  func.func @_cross_attn_kernel_resident(%arg0: i32, %arg1: memref<8x128xf32, #tpu.memory_space<vmem>>, %arg2: memref<128x128xf32, #tpu.memory_space<vmem>>, %arg3: memref<1x128xf32, #tpu.memory_space<vmem>>, %arg4: memref<128x8xf32, #tpu.memory_space<vmem>>, %arg5: memref<8x128xf32, #tpu.memory_space<vmem>>, %arg6: memref<8x1xf32, #tpu.memory_space<vmem>>) attributes {dimension_semantics = [#tpu.dimension_semantics<parallel>], iteration_bounds = array<i64: 2>, scalar_prefetch = 0 : i64, scratch_operands = 0 : i64, tpu.core_type = #tpu.core_type<tc>, window_params = [{transform_indices = @transform_0, window_bounds = array<i64: 8, 128>}, {pipeline_mode = #tpu.pipeline_mode<synchronous>, transform_indices = @transform_1, window_bounds = array<i64: 128, 128>}, {pipeline_mode = #tpu.pipeline_mode<synchronous>, transform_indices = @transform_2, window_bounds = array<i64: 1, 128>}, {pipeline_mode = #tpu.pipeline_mode<synchronous>, transform_indices = @transform_3, window_bounds = array<i64: 128, 8>}, {transform_indices = @transform_4, window_bounds = array<i64: 8, 128>}, {transform_indices = @transform_5, window_bounds = array<i64: 8, 1>}]} {
    %c0 = arith.constant 0 : index
    %c0_0 = arith.constant 0 : index
    %0 = vector.load %arg1[%c0, %c0_0] : memref<8x128xf32, #tpu.memory_space<vmem>>, vector<8x128xf32>
    %c0_1 = arith.constant 0 : index
    %c0_2 = arith.constant 0 : index
    %1 = vector.load %arg2[%c0_1, %c0_2] : memref<128x128xf32, #tpu.memory_space<vmem>>, vector<128x128xf32>
    %cst = arith.constant dense<0.000000e+00> : vector<8x128xf32>
    %2 = tpu.matmul %0, %1, %cst {dimension_numbers = #tpu.dot_dimension_numbers<[1], [0], [0], [1], [0, 0, 1, 1], [], []>} : vector<8x128xf32>, vector<128x128xf32>, vector<8x128xf32> -> vector<8x128xf32>
    %c0_3 = arith.constant 0 : index
    %c0_4 = arith.constant 0 : index
    %3 = vector.load %arg3[%c0_3, %c0_4] : memref<1x128xf32, #tpu.memory_space<vmem>>, vector<1x128xf32>
    %4 = vector.broadcast %3 : vector<1x128xf32> to vector<8x128xf32>
    %5 = arith.addf %2, %4 : vector<8x128xf32>
    %c0_5 = arith.constant 0 : index
    %c0_6 = arith.constant 0 : index
    %6 = vector.load %arg5[%c0_5, %c0_6] : memref<8x128xf32, #tpu.memory_space<vmem>>, vector<8x128xf32>
    tpu.vector_store %arg5[%c0_5, %c0_6], %5 {strides = array<i32>} : memref<8x128xf32, #tpu.memory_space<vmem>>, vector<8x128xf32>,
    %c0_7 = arith.constant 0 : index
    %c0_8 = arith.constant 0 : index
    %7 = vector.load %arg4[%c0_7, %c0_8] : memref<128x8xf32, #tpu.memory_space<vmem>>, vector<128x8xf32>
    %cst_9 = arith.constant dense<0.000000e+00> : vector<8x8xf32>
    %8 = tpu.matmul %5, %7, %cst_9 {dimension_numbers = #tpu.dot_dimension_numbers<[1], [0], [0], [1], [0, 0, 1, 1], [], []>} : vector<8x128xf32>, vector<128x8xf32>, vector<8x8xf32> -> vector<8x8xf32>
    %cst_10 = arith.constant dense<0xFF800000> : vector<8xf32>
    %9 = vector.multi_reduction <maximumf>, %8, %cst_10 [1] : vector<8x8xf32> to vector<8xf32>
    %10 = vector.shape_cast %9 : vector<8xf32> to vector<8x1xf32>
    %c0_11 = arith.constant 0 : index
    %c0_12 = arith.constant 0 : index
    %11 = vector.load %arg6[%c0_11, %c0_12] : memref<8x1xf32, #tpu.memory_space<vmem>>, vector<8x1xf32>
    tpu.vector_store %arg6[%c0_11, %c0_12], %10 {strides = array<i32>} : memref<8x1xf32, #tpu.memory_space<vmem>>, vector<8x1xf32>,
    return
  }
  func.func @transform_0(%arg0: i32) -> (i32, i32) {
    %c0_i32 = arith.constant 0 : i32
    %c0_i32_0 = arith.constant 0 : i32
    return %arg0, %c0_i32 : i32, i32
  }
  func.func @transform_1(%arg0: i32) -> (i32, i32) {
    %c0_i32 = arith.constant 0 : i32
    %c0_i32_0 = arith.constant 0 : i32
    %c0_i32_1 = arith.constant 0 : i32
    return %c0_i32, %c0_i32_0 : i32, i32
  }
  func.func @transform_2(%arg0: i32) -> (i32, i32) {
    %c0_i32 = arith.constant 0 : i32
    %c0_i32_0 = arith.constant 0 : i32
    %c0_i32_1 = arith.constant 0 : i32
    return %c0_i32, %c0_i32_0 : i32, i32
  }
  func.func @transform_3(%arg0: i32) -> (i32, i32) {
    %c0_i32 = arith.constant 0 : i32
    %c0_i32_0 = arith.constant 0 : i32
    %c0_i32_1 = arith.constant 0 : i32
    return %c0_i32, %c0_i32_0 : i32, i32
  }
  func.func @transform_4(%arg0: i32) -> (i32, i32) {
    %c0_i32 = arith.constant 0 : i32
    %c0_i32_0 = arith.constant 0 : i32
    return %arg0, %c0_i32 : i32, i32
  }
  func.func @transform_5(%arg0: i32) -> (i32, i32) {
    %c0_i32 = arith.constant 0 : i32
    %c0_i32_0 = arith.constant 0 : i32
    return %arg0, %c0_i32 : i32, i32
  }
}

</mosaic_0001>

<bundles_post_ra>
// kernel: tpu_custom_call.1
= control target key start
LH: loop header
LB: loop body
LE: loop exit
PB: predicated region body
PF: predicated region fallthrough
CT: control target
= control target key end

     0   :  { %11 = vsyncpa [#allocation3], 0  ;;  %s1133_s0 = inlined_call_operand.hbm [shape: f32[16,128], index: 0, kind: input, shape index: {}]   ;;  %s1134_s1 = inlined_call_operand.vmem [shape: f32[128,128], index: 1, kind: input, shape index: {}]   ;;  %s1135_s2 = inlined_call_operand.vmem [shape: f32[1,128], index: 2, kind: input, shape index: {}]   ;;  %s1136_s3 = inlined_call_operand.vmem [shape: f32[128,8], index: 3, kind: input, shape index: {}]   ;;  %s1137_s4 = inlined_call_operand.hbm [shape: f32[16,128], index: 4, kind: output, shape index: {0}]   ;;  %s1138_s5 = inlined_call_operand.vmem [shape: f32[16,1], index: 5, kind: output, shape index: {1}]  }
   0x1   :  { %13 = vsyncpa [#allocation3 + $0x1], 0 }
   0x2   :  { %14 = vsyncpa [#allocation4], 0 }
   0x3   :  { %16 = vsyncpa [#allocation4 + $0x1], 0  ;;  %s847_s18 = smov 0   ;;  %s849_s19 = smov 0  }
   0x4   :  { %s851_s20 = smov 0   ;;  %s853_s21 = smov 0  }
   0x5 LB: > { %s868_s22 = sadd.s32 4294967295, %s811_s21   ;;  %s553_s23 = sadd.s32 4294967294, %s811_s21   ;;  %s811_s21 = sphi %s853_s21, %s1155_s21   ;;  %s807_s20 = sphi %s851_s20, %s1154_s20   ;;  %s803_s19 = sphi %s849_s19, %s1153_s19   ;;  %s799_s18 = sphi %s847_s18, %s1152_s18  }
   0x6   : > { %s872_s24 = sadd.s32 1, %s811_s21   ;;  %s29_s25 = sadd.s32 1, %s807_s20 }
   0x7   : > { %s26_s26 = ssub.s32 %s811_s21, %s872_s24  ;;  %p36_p0 = scmp.ne.s32.totalorder %s807_s20, %s803_s19 }
   0x8   : > { %p27_p1 = scmp.eq.s32.totalorder %s26_s26, 0  ;;  %p37_p2 = scmp.eq.s32.totalorder %s811_s21, 0 }
   0x9   : > { %p42_p3 = scmp.ne.s32.totalorder %s803_s19, %s799_s18  ;;  %p43_p4 = scmp.eq.s32.totalorder %s868_s22, 0 }
   0xa   : > { %s884_s27 = scalar_select %p27_p1, %s807_s20, %s29_s25  }
   0xb   : > { %p886_p5 = por %p37_p2, %p36_p0  ;;  %p890_p6 = por %p43_p4, %p42_p3 }
   0xc   : > { %p129_p7 = scmp.eq.s32.totalorder %s868_s22, 1  ;;  %p135_p8 = scmp.eq.s32.totalorder %s553_s23, 1 }
   0xd   : > { %s1142_s29 = scalar_select %p890_p6, 1, 0 }
   0xe   : > { %p683_p10 = scmp.lt.s32.totalorder %s811_s21, 2  ;;  %p897_p11 = por %p129_p7, %p36_p0 }
   0xf   : > { %p901_p12 = por %p135_p8, %p42_p3  ;;  %s190_s7 = sand.u32 1, %s807_s20  }
  0x10   : > { %s1143_s30 = scalar_select %p897_p11, 1, 0 }
  0x11   : > { %s1144_s6 = scalar_select %p901_p12, 1, 0 }
  0x12   : > { %s557_s8 = sshll.u32 %s811_s21, 7  ;;  %s556_s9 = sshll.u32 %s190_s7, 3 }
  0x13   : > { %s910_s12 = scalar_lea.hbm %s1133_s0, %s557_s8  ;;  %s194_s13 = scalar_lea.vmem [#allocation2], %s556_s9 }
  0x14   : > { %s201_s14 = sshll.u32 %s194_s13, 4  ;;  %p914_p13 = pnand %p683_p10, %p886_p5  ;;  %s918_s14 = int_to_ptr.vmem [resolvable:$true] %s201_s14 }
  0x15   : > { %s191_s16 = scalar_lea.sflag [#allocation3], %s190_s7  ;;  %s719_s17 = scalar_lea.hbm %s910_s12, 128 }
  0x16   : > { %p720_p2 = scmp.ne.s32.totalorder %s910_s12, %s719_s17  ;;  %p721_p3 = pneg %p914_p13 }
  0x17   : > { %s724_s26 = scalar_lea.hbm %s1133_s0, 256  ;;  %p725_p5 = scmp.lt.s32.totalorder %s910_s12, %s1133_s0 }
  0x18   : > { %p722_p4 = pnand %p721_p3, %p720_p2  ;;  %p726_p8 = scmp.lt.s32.totalorder %s724_s26, %s719_s17 }
  0x1a   : > { %p723_p7 = pneg %p722_p4  ;;  %p727_p10 = por %p726_p8, %p725_p5 }
  0x1c   : > { %p728_p9 = pnand %p727_p10, %p723_p7 }
  0x1e   : > { %731 = shalt.err (!%p728_p9)
}
  0x1f   : > { %s732_s7 = scalar_lea.vmem %s918_s14, 128  ;;  %s813_s9 = smov [#allocation2]  }
  0x20   : > { %p733_p0 = scmp.ne.s32.totalorder %s918_s14, %s732_s7  ;;  %s737_s10 = sshll.u32 %s813_s9, 4  ;;  %s738_s10 = int_to_ptr.vmem [resolvable:$false] %s737_s10 }
  0x21   : > { %s739_s11 = scalar_lea.vmem %s738_s10, 256  ;;  %p740_p4 = scmp.lt.s32.totalorder %s918_s14, %s738_s10 }
  0x22   : > { %p735_p1 = pnand %p733_p0, %p721_p3  ;;  %p741_p12 = scmp.lt.s32.totalorder %s739_s11, %s732_s7 }
  0x24   : > { %p736_p2 = pneg %p735_p1  ;;  %p742_p11 = por %p741_p12, %p740_p4 }
  0x26   : > { %p743_p6 = pnand %p742_p11, %p736_p2 }
  0x28   : > { %746 = shalt.err (!%p743_p6)
}
  0x29   : > { %678 = dma.hbm_to_vmem [thread:$0]  (!%p914_p13), %s910_s12, 128, %s918_s14, %s191_s16  }
  0x2a   : > { %p1146_p9 = scmp.lt.s32.totalorder %s811_s21, 3  ;;  %p1147_p7 = scmp.ge.s32.totalorder %s811_s21, 1 }
  0x2c   : > { %p207_p0 = pnand %p1147_p7, %p1146_p9 }
  0x2d   : > { %s945_s13 = sand.u32 (!%p207_p0), 1, %s803_s19   ;;  %p1148_p6 = scmp.ne.s32.totalorder (!%p207_p0), %s1142_s29, 0 }
  0x2e   : > { %210 = sbr.rel (%p207_p0) target bundleno = 614 (0x266), region = 36  ;;  %s559_s17 = sshll.u32 (!%p207_p0), %s945_s13, 3 }
  0x2f   : > { %s213_s23 = scalar_lea.sflag (!%p207_p0), [#allocation3], %s945_s13  ;;  %s951_s15 = scalar_lea.vmem (!%p207_p0), [#allocation2], %s559_s17 }
  0x33   : > { %790 = dma.done.wait (%p1148_p6), %s213_s23, 128  }
  0x34   : > { %792 = vsyncadd (%p1148_p6), %s213_s23, 4294967168  ;;  %v814_v0 = vmov 0.0   ;;  %vm815_vm0 = vmmov 0   ;;  %v267_v1 = vld [vmem:[%s1134_s1 + $0x78] sm:$0xff]  ;;  %v266_v2 = vld [vmem:[%s1134_s1 + $0x70] sm:$0xff]  ;;  %s240_s12 = scalar_lea.vmem [#allocation5], %s559_s17 }
  0x35   : > { %601 = vmatprep.subr.mxu0 %v814_v0  ;;  %633 = vmatprep.mubr.msk.f32.mxu0 %vm815_vm0, %v814_v0  ;;  %v265_v3 = vld [vmem:[%s1134_s1 + $0x68] sm:$0xff]  ;;  %v264_v4 = vld [vmem:[%s1134_s1 + $0x60] sm:$0xff]  ;;  %v361_v5 = vld [vmem:[%s1136_s3 + $0x78] sm:$0xff]  ;;  %vm432_vm1 = vcmask 64512   ;;  %s564_s14 = sshll.u32 %s868_s22, 7  ;;  %s456_s16 = sshll.u32 %s240_s12, 4  ;;  %s457_s16 = int_to_ptr.vmem [resolvable:$true] %s456_s16 }
  0x36   : > { %636 = vmatprep.subr.mxu1 %v814_v0  ;;  %668 = vmatprep.mubr.msk.f32.mxu1 %vm815_vm0, %v814_v0  ;;  %v263_v6 = vld [vmem:[%s1134_s1 + $0x58] sm:$0xff]  ;;  %v360_v7 = vld [vmem:[%s1136_s3 + $0x70] sm:$0xff]  ;;  %v359_v8 = vld [vmem:[%s1136_s3 + $0x68] sm:$0xff]  ;;  %s454_s26 = scalar_lea.hbm %s1137_s4, %s564_s14  ;;  %s439_s28 = scalar_lea.sflag [#allocation4], %s945_s13 }
  0x37   : > { %602 = vmatpush3.msra.mxu0 %v267_v1  ;;  %637 = vmatpush3.msra.mxu1 %v361_v5  ;;  %v262_v9 = vld [vmem:[%s1134_s1 + $0x50] sm:$0xff]  ;;  %v358_v10 = vld [vmem:[%s1136_s3 + $0x60] sm:$0xff]  ;;  %v261_v11 = vld [vmem:[%s1134_s1 + $0x48] sm:$0xff]  ;;  %s747_s8 = scalar_lea.vmem %s457_s16, 128  ;;  %p1149_p12 = scmp.ne.s32.totalorder %s1143_s30, 0 }
  0x38   : > { %603 = vmatprep.subr.mxu0 %v814_v0  ;;  %638 = vmatprep.subr.mxu1 %v814_v0  ;;  %v357_v12 = vld [vmem:[%s1136_s3 + $0x58] sm:$0xff]  ;;  %v260_v13 = vld [vmem:[%s1134_s1 + $0x40] sm:$0xff]  ;;  %v356_v14 = vld [vmem:[%s1136_s3 + $0x50] sm:$0xff]  ;;  %p748_p11 = scmp.ne.s32.totalorder %s457_s16, %s747_s8  ;;  %s816_s17 = smov [#allocation5]  }
  0x39   : > { %604 = vmatpush3.msra.mxu0 %v266_v2  ;;  %639 = vmatpush3.msra.mxu1 %v360_v7  ;;  %v259_v15 = vld [vmem:[%s1134_s1 + $0x38] sm:$0xff]  ;;  %v355_v16 = vld [vmem:[%s1136_s3 + $0x48] sm:$0xff]  ;;  %v258_v17 = vld [vmem:[%s1134_s1 + $0x30] sm:$0xff]  ;;  %s751_s7 = sshll.u32 %s816_s17, 4  ;;  %s752_s7 = int_to_ptr.vmem [resolvable:$false] %s751_s7 }
  0x3a   : > { %605 = vmatprep.subr.mxu0 %v814_v0  ;;  %640 = vmatprep.subr.mxu1 %v814_v0  ;;  %v354_v18 = vld [vmem:[%s1136_s3 + $0x40] sm:$0xff]  ;;  %v257_v19 = vld [vmem:[%s1134_s1 + $0x28] sm:$0xff]  ;;  %v353_v20 = vld [vmem:[%s1136_s3 + $0x38] sm:$0xff]  ;;  %p749_p13 = pnand %p748_p11, %p1149_p12  ;;  %s753_s9 = scalar_lea.vmem %s752_s7, 256 }
  0x3b   : > { %606 = vmatpush3.msra.mxu0 %v265_v3  ;;  %641 = vmatpush3.msra.mxu1 %v359_v8  ;;  %v256_v21 = vld [vmem:[%s1134_s1 + $0x20] sm:$0xff]  ;;  %v352_v22 = vld [vmem:[%s1136_s3 + $0x30] sm:$0xff]  ;;  %v255_v23 = vld [vmem:[%s1134_s1 + $0x18] sm:$0xff]  ;;  %p754_p3 = scmp.lt.s32.totalorder %s457_s16, %s752_s7  ;;  %p755_p5 = scmp.lt.s32.totalorder %s753_s9, %s747_s8 }
  0x3c   : > { %607 = vmatprep.subr.mxu0 %v814_v0  ;;  %642 = vmatprep.subr.mxu1 %v814_v0  ;;  %v351_v24 = vld [vmem:[%s1136_s3 + $0x28] sm:$0xff]  ;;  %v254_v25 = vld [vmem:[%s1134_s1 + $0x10] sm:$0xff]  ;;  %v350_v26 = vld [vmem:[%s1136_s3 + $0x20] sm:$0xff]  ;;  %p750_p1 = pneg %p749_p13 }
  0x3d   : > { %608 = vmatpush3.msra.mxu0 %v264_v4  ;;  %643 = vmatpush3.msra.mxu1 %v358_v10  ;;  %v253_v27 = vld [vmem:[%s1134_s1 + $0x8] sm:$0xff]  ;;  %v349_v28 = vld [vmem:[%s1136_s3 + $0x18] sm:$0xff]  ;;  %v252_v29 = vld [vmem:[%s1134_s1] sm:$0xff]  ;;  %p756_p8 = por %p755_p5, %p754_p3 }
  0x3e   : > { %609 = vmatprep.subr.mxu0 %v814_v0  ;;  %644 = vmatprep.subr.mxu1 %v814_v0  ;;  %v251_v30 = vld [vmem:[%s951_s15] sm:$0xff]  ;;  %v348_v31 = vld [vmem:[%s1136_s3 + $0x10] sm:$0xff] }
  0x3f   : > { %610 = vmatpush3.msra.mxu0 %v263_v6  ;;  %645 = vmatpush3.msra.mxu1 %v357_v12  ;;  %v347_v32 = vld [vmem:[%s1136_s3 + $0x8] sm:$0xff]  ;;  %v346_v33 = vld [vmem:[%s1136_s3] sm:$0xff]  ;;  %p757_p10 = pnand %p756_p8, %p750_p1 }
  0x40   : > { %611 = vmatprep.subr.mxu0 %v814_v0  ;;  %646 = vmatprep.subr.mxu1 %v814_v0  ;;  %v562_v34 = vld [vmem:[%s1135_s2] ss:$0 sm:$0xff] }
  0x41   : > { %612 = vmatpush3.msra.mxu0 %v262_v9  ;;  %647 = vmatpush3.msra.mxu1 %v356_v14 }
  0x42   : > { %613 = vmatprep.subr.mxu0 %v814_v0  ;;  %648 = vmatprep.subr.mxu1 %v814_v0 }
  0x43   : > { %614 = vmatpush3.msra.mxu0 %v261_v11  ;;  %649 = vmatpush3.msra.mxu1 %v355_v16 }
  0x44   : > { %615 = vmatprep.subr.mxu0 %v814_v0  ;;  %650 = vmatprep.subr.mxu1 %v814_v0 }
  0x45   : > { %616 = vmatpush3.msra.mxu0 %v260_v13  ;;  %651 = vmatpush3.msra.mxu1 %v354_v18 }
  0x46   : > { %617 = vmatprep.subr.mxu0 %v814_v0  ;;  %652 = vmatprep.subr.mxu1 %v814_v0 }
  0x47   : > { %618 = vmatpush3.msra.mxu0 %v259_v15  ;;  %653 = vmatpush3.msra.mxu1 %v353_v20 }
  0x48   : > { %619 = vmatprep.subr.mxu0 %v814_v0  ;;  %654 = vmatprep.subr.mxu1 %v814_v0 }
  0x49   : > { %620 = vmatpush3.msra.mxu0 %v258_v17  ;;  %655 = vmatpush3.msra.mxu1 %v352_v22 }
  0x4a   : > { %621 = vmatprep.subr.mxu0 %v814_v0  ;;  %656 = vmatprep.subr.mxu1 %v814_v0 }
  0x4b   : > { %622 = vmatpush3.msra.mxu0 %v257_v19  ;;  %657 = vmatpush3.msra.mxu1 %v351_v24 }
  0x4c   : > { %623 = vmatprep.subr.mxu0 %v814_v0  ;;  %658 = vmatprep.subr.mxu1 %v814_v0 }
  0x4d   : > { %624 = vmatpush3.msra.mxu0 %v256_v21  ;;  %659 = vmatpush3.msra.mxu1 %v350_v26 }
  0x4e   : > { %625 = vmatprep.subr.mxu0 %v814_v0  ;;  %660 = vmatprep.subr.mxu1 %v814_v0 }
  0x4f   : > { %626 = vmatpush3.msra.mxu0 %v255_v23  ;;  %661 = vmatpush3.msra.mxu1 %v349_v28 }
  0x50   : > { %627 = vmatprep.subr.mxu0 %v814_v0  ;;  %662 = vmatprep.subr.mxu1 %v814_v0 }
  0x51   : > { %628 = vmatpush3.msra.mxu0 %v254_v25  ;;  %663 = vmatpush3.msra.mxu1 %v348_v31 }
  0x52   : > { %629 = vmatprep.subr.mxu0 %v814_v0  ;;  %664 = vmatprep.subr.mxu1 %v814_v0 }
  0x53   : > { %630 = vmatpush3.msra.mxu0 %v253_v27  ;;  %665 = vmatpush3.msra.mxu1 %v347_v32 }
  0x54   : > { %631 = vmatprep.subr.mxu0 %v814_v0  ;;  %666 = vmatprep.subr.mxu1 %v814_v0 }
  0x55   : > { %632 = vmatpush3.msra.mxu0 %v252_v29  ;;  %667 = vmatpush3.msra.mxu1 %v346_v33 }
  0x56   : > { %634 = vmatmul.mubr.f32.vlgmr.msra.gmra.mxu0 %v251_v30 }
 0x116   : > { %v341_v35 = vpop.f32.mrf.mxu0 }
 0x117   : > { %v342_v36 = vadd.f32 %v562_v34, %v341_v35 }
 0x118   : > { %v635_v37 = vpop.f32.mrf.mxu0 }
 0x119   : > { %345 = vst [vmem:[%s240_s12] sm:$0xff] %v342_v36  ;;  %669 = vmatmul.mubr.f32.vlgmr.msra.gmra.mxu1 %v342_v36 }
 0x1d9   : > { %v428_v38 = vpop.f32.mrf.mxu1 }
 0x1da   : > { %v433_v39 = vsel %vm432_vm1, %v428_v38, -inf }
 0x1db   : > { %v670_v40 = vpop.f32.mrf.mxu1  ;;  %434 = vmax.xlane.f32.xlu0 %v433_v39 }
 0x1dc   : > { %760 = shalt.err (!%p757_p10)
}
 0x1dd   : > { %s761_s15 = scalar_lea.hbm %s454_s26, 128  ;;  %s765_s11 = scalar_lea.hbm %s1137_s4, 256 }
 0x1de   : > { %p762_p2 = scmp.ne.s32.totalorder %s454_s26, %s761_s15  ;;  %p766_p7 = scmp.lt.s32.totalorder %s454_s26, %s1137_s4 }
 0x1df   : > { %p767_p0 = scmp.lt.s32.totalorder %s765_s11, %s761_s15 }
 0x1e0   : > { %p763_p4 = pnand %p762_p2, %p1149_p12 }
 0x1e1   : > { %p768_p6 = por %p767_p0, %p766_p7 }
 0x1e2   : > { %p764_p9 = pneg %p763_p4 }
 0x1e4   : > { %p769_p11 = pnand %p768_p6, %p764_p9 }
 0x1e6   : > { %772 = shalt.err (!%p769_p11)
}
 0x1e7   : > { %673 = dma.vmem_to_hbm [thread:$0]  (%p1149_p12), %s457_s16, 128, %s454_s26, %s439_s28   ;;  %vm436_vm2 = vcmask 7168  }
 0x1e8   : > { %p247_p13 = scmp.lt.s32.totalorder %s868_s22, 1 }
 0x1ea   : > { %s1157_s22 = smov (!%p247_p13, %s868_s22), 1 }
 0x1eb   : > { %s561_s14 = sshll.u32 %s1157_s22, 3 }
 0x1ec   : > { %s250_s8 = scalar_lea.vmem %s1138_s5, %s561_s14 }
 0x264   : > { %v435_v41 = vpop.xlane.xlu0 %434 }
 0x265   : > { %437 = vst.msk [vmem:[%s250_s8] sm:$0xff] %vm436_vm2, %v435_v41 }
 0x266 PF: > { %s471_s17 = sand.u32 1, %s799_s18   ;;  %p1150_p1 = scmp.ne.s32.totalorder %s1144_s6, 0 }
 0x267   : > { %p1151_p3 = scmp.ge.s32.totalorder %s811_s21, 2  ;;  %s472_s30 = scalar_lea.sflag [#allocation4], %s471_s17 }
 0x269   : > { %p680_p5 = pnand %p1151_p3, %p1150_p1 }
 0x26b   : > { %p681_p8 = pneg %p680_p5 }
 0x26d   : > { %794 = dma.done.wait (%p681_p8), %s472_s30, 128  }
 0x26e   : > { %796 = vsyncadd (%p681_p8), %s472_s30, 4294967168  ;;  %p19_p12 = scmp.ge.s32.totalorder %s872_s24, 4   ;;  %s1152_s18 = smov %s803_s19 }
 0x26f   : > { %s1153_s19 = smov %s807_s20  ;;  %s1154_s20 = smov %s884_s27 }
 0x270   : > { %s1155_s21 = smov %s872_s24  ;;  %21 = sbr.rel (!%p19_p12) target bundleno = 5 (0x5), region = 93 }
 0x275   :  { %484 = vsyncpa [#allocation3], 1 }
 0x276   :  { %486 = vsyncpa [#allocation3 + $0x1], 1 }
 0x277   :  { %487 = vsyncpa [#allocation4], 1 }
 0x278   :  { %489 = vsyncpa [#allocation4 + $0x1], 1 }

</bundles_post_ra>
